<compile_context>
chip_gen: v7x
topology: tpu7x:2x2x1
jax: 0.10.0
libtpu: 0.0.40
codegen_flags: <defaults>
</compile_context>

<pallas_src>
import functools

import jax
import jax.numpy as jnp
import numpy as np
from jax import lax
from jax.experimental import pallas as pl
from jax.experimental.pallas import tpu as pltpu

EPS = 1e-10
BN_EPS = 1e-5
THIRD = 1.0 / 3.0


# ----------------------------------------------------------------------------
# Kernel
# ----------------------------------------------------------------------------
def chain_linear_kernel(x_ref,
                        w_in_ref, b_in_ref,
                        w1_ref, b1_ref,
                        w2_ref, b2_ref,
                        wh_ref, bh_ref,
                        cls_ref, reg_ref):
    """Batch-major MLP chain.

    x_ref  : (T, 8)    f32   input row block
    w_in   : (8, D)    f32   BN-folded, kept f32 (K=8 layer, accuracy free)
    w1,w2  : (D, D)    bf16  BN-folded
    wh     : (D, 16)   bf16  5 heads + BNs fused (cols 0:3 cls, 3:6 alpha,
                             6:9 beta, 9:12 gamma, 12:15 abundance, 15 pad)
    b*     : (1, out)  f32
    cls_ref: (T, 3)    f32   raw class logits (bn_cls applied)
    reg_ref: (T, 12)   f32   [alpha, beta, gamma, abundance] after masking
    """
    x = x_ref[...]                                                      # (T, 8) f32

    # relu(input_bn(input_linear(bn_first(x))))  [BNs folded into w/b], f32 matmul
    h = jnp.dot(x, w_in_ref[...], preferred_element_type=jnp.float32)
    h = jnp.maximum(h + b_in_ref[...], 0.0)                             # (T, D)

    # relu(bn1(linear1(.)))
    h = jnp.dot(h.astype(jnp.bfloat16), w1_ref[...],
                preferred_element_type=jnp.float32)
    h = jnp.maximum(h + b1_ref[...], 0.0)

    # relu(bn2(linear2(.)))
    h = jnp.dot(h.astype(jnp.bfloat16), w2_ref[...],
                preferred_element_type=jnp.float32)
    h = jnp.maximum(h + b2_ref[...], 0.0)

    # All 5 heads + their BNs in one (D, 16) matmul.
    heads = jnp.dot(h.astype(jnp.bfloat16), wh_ref[...],
                    preferred_element_type=jnp.float32) + bh_ref[...]   # (T, 16)

    # argmax over the 3 class logits (first-max wins on ties, like torch).
    c0 = heads[:, 0:1]
    c1 = heads[:, 1:2]
    c2 = heads[:, 2:3]
    is0 = jnp.logical_and(c0 >= c1, c0 >= c2)                           # (T, 1)
    is1 = jnp.logical_and(jnp.logical_not(is0), c1 >= c2)
    is01 = jnp.logical_or(is0, is1)

    col = lax.broadcasted_iota(jnp.int32, heads.shape, 1)               # (T, 16)
    sig = jax.nn.sigmoid(heads)
    out = jnp.where(col < 3, heads, sig)        # cls raw, everything else sigmoid

    # beta (cols 6:9) -> 1/3 for classes 0 and 1
    out = jnp.where((col >= 6) & (col < 9) & is01, THIRD, out)
    # gamma (cols 9:12) -> 1/3 for class 1
    out = jnp.where((col >= 9) & (col < 12) & is1, THIRD, out)
    # abundance (cols 12:15): class 0 -> [a0, EPS, EPS]; class 1 -> [a0, a1, EPS]
    out = jnp.where((col >= 13) & (col < 15) & is0, EPS, out)
    out = jnp.where((col == 14) & is1, EPS, out)

    cls_ref[...] = out[:, 0:3]
    reg_ref[...] = out[:, 3:15]


# ----------------------------------------------------------------------------
# Pallas wrapper
# ----------------------------------------------------------------------------
def _pick_batch_tile(n: int) -> int:
    """Scale tile with N: single block up to 1024 rows (no padding waste),
    otherwise ~N/2 rounded to a 512 multiple (>=2 grid steps for v7x megacore),
    capped at 4096 (amortizes the ~0.35us/step overhead, fits scoped VMEM)."""
    if n <= 1024:
        return n
    tile = ((n // 2) + 511) // 512 * 512
    return max(512, min(4096, tile))


@functools.partial(jax.jit, static_argnames=("batch_tile",))
def _chain_linear_call(x, w_in, b_in, w1, b1, w2, b2, wh, bh, *, batch_tile):
    n = x.shape[0]
    grid = (pl.cdiv(n, batch_tile),)          # ragged tail handled by Pallas padding

    def full(a):
        nd = a.ndim
        return pl.BlockSpec(a.shape, lambda i, _nd=nd: (0,) * _nd)

    params = (w_in, b_in, w1, b1, w2, b2, wh, bh)
    return pl.pallas_call(
        chain_linear_kernel,
        out_shape=(jax.ShapeDtypeStruct((n, 3), jnp.float32),
                   jax.ShapeDtypeStruct((n, 12), jnp.float32)),
        grid=grid,
        in_specs=[pl.BlockSpec((batch_tile, 8), lambda i: (i, 0))]
                 + [full(a) for a in params],          # weights stay VMEM-resident
        out_specs=(pl.BlockSpec((batch_tile, 3), lambda i: (i, 0)),
                   pl.BlockSpec((batch_tile, 12), lambda i: (i, 0))),
        compiler_params=pltpu.CompilerParams(
            dimension_semantics=("parallel",),        # megacore sharding on v7x
            vmem_limit_bytes=(48 * 1024 * 1024 if batch_tile > 1024 else None)),
    )(x, *params)


def chain_linear_forward(x, packed, batch_tile=None):
    """x: (N, 8) f32 -> (class_out (N, 3), regression_out (N, 12))."""
    n, f = x.shape
    assert f == 8
    if batch_tile is None:
        batch_tile = _pick_batch_tile(n)
    return _chain_linear_call(x, *packed, batch_tile=batch_tile)


# ----------------------------------------------------------------------------
# Parameters: raw (torch-like) params, eval-mode BN folding, kernel packing
# ----------------------------------------------------------------------------
def bn_scale_shift(gamma, beta, mean, var):
    scale = gamma / jnp.sqrt(var + BN_EPS)
    shift = beta - mean * scale
    return scale, shift


def init_raw_params(key, dim=128):
    """Deterministic torch-style init: Linear weights (out, in), BN running stats."""
    ks = jax.random.split(key, 16)

    def lin(k, fan_in, fan_out):
        bound = 1.0 / np.sqrt(fan_in)
        kw, kb = jax.random.split(k)
        w = jax.random.uniform(kw, (fan_out, fan_in), jnp.float32, -bound, bound)
        b = jax.random.uniform(kb, (fan_out,), jnp.float32, -bound, bound)
        return w, b

    def bn(k, n):
        k1, k2, k3, k4 = jax.random.split(k, 4)
        gamma = 1.0 + 0.1 * jax.random.normal(k1, (n,), jnp.float32)
        beta = 0.1 * jax.random.normal(k2, (n,), jnp.float32)
        mean = 0.1 * jax.random.normal(k3, (n,), jnp.float32)
        var = 0.5 + 0.5 * jnp.abs(jax.random.normal(k4, (n,), jnp.float32))
        return gamma, beta, mean, var

    p = {}
    p["bn_first"] = bn(ks[0], 8)
    p["w_in"], p["b_in"] = lin(ks[1], 8, dim)
    p["input_bn"] = bn(ks[2], dim)
    p["w1"], p["b1"] = lin(ks[3], dim, dim)
    p["bn1"] = bn(ks[4], dim)
    p["w2"], p["b2"] = lin(ks[5], dim, dim)
    p["bn2"] = bn(ks[6], dim)
    p["w_cls"], p["b_cls"] = lin(ks[7], dim, 3)
    p["w_a"], p["b_a"] = lin(ks[8], dim, 3)
    p["w_b"], p["b_b"] = lin(ks[9], dim, 3)
    p["w_g"], p["b_g"] = lin(ks[10], dim, 3)
    p["w_ab"], p["b_ab"] = lin(ks[11], dim, 3)
    p["bn_cls"] = bn(ks[12], 3)
    p["bn_a"] = bn(ks[13], 3)
    p["bn_b"] = bn(ks[14], 3)
    kg, kab = jax.random.split(ks[15])
    p["bn_g"] = bn(kg, 3)
    p["bn_ab"] = bn(kab, 3)
    return p


def fold_params(raw):
    """Fold every eval-mode BatchNorm into the adjacent Linear (exact in f32)
    and stack the 5 heads (+1 zero pad row) into one (16, D) weight."""
    def ss(name):
        return bn_scale_shift(*raw[name])

    # bn_first -> input_linear -> input_bn
    sf, tf = ss("bn_first")
    s_in, t_in = ss("input_bn")
    w = raw["w_in"] * sf[None, :]                   # absorb bn_first scale
    b = raw["w_in"] @ tf + raw["b_in"]              # absorb bn_first shift
    w_in = s_in[:, None] * w                        # absorb input_bn
    b_in = s_in * b + t_in

    def fold_simple(wk, bk, bn_name):
        s, t = ss(bn_name)
        return s[:, None] * raw[wk], s * raw[bk] + t

    w1, b1 = fold_simple("w1", "b1", "bn1")
    w2, b2 = fold_simple("w2", "b2", "bn2")

    whs, bhs = [], []
    for wk, bk, bnk in (("w_cls", "b_cls", "bn_cls"),
                        ("w_a", "b_a", "bn_a"),
                        ("w_b", "b_b", "bn_b"),
                        ("w_g", "b_g", "bn_g"),
                        ("w_ab", "b_ab", "bn_ab")):
        wf, bf_ = fold_simple(wk, bk, bnk)
        whs.append(wf)
        bhs.append(bf_)
    wh = jnp.concatenate(whs, axis=0)                                     # (15, D)
    bh = jnp.concatenate(bhs, axis=0)                                     # (15,)
    dim = wh.shape[1]
    wh = jnp.concatenate([wh, jnp.zeros((1, dim), jnp.float32)], axis=0)  # (16, D)
    bh = jnp.concatenate([bh, jnp.zeros((1,), jnp.float32)], axis=0)      # (16,)

    return {"w_in": w_in, "b_in": b_in, "w1": w1, "b1": b1,
            "w2": w2, "b2": b2, "wh": wh, "bh": bh}


def pack_for_kernel(folded):
    """Transpose to (in, out), cast the K=128 weights to bf16, biases to (1, out)."""
    bf16 = jnp.bfloat16
    return (
        folded["w_in"].T,                    # (8, D)  f32: first layer stays f32
        folded["b_in"].reshape(1, -1),
        folded["w1"].T.astype(bf16),         # (D, D)
        folded["b1"].reshape(1, -1),
        folded["w2"].T.astype(bf16),         # (D, D)
        folded["b2"].reshape(1, -1),
        folded["wh"].T.astype(bf16),         # (D, 16)
        folded["bh"].reshape(1, -1),
    )


# ----------------------------------------------------------------------------
# Pure-JAX references
# ----------------------------------------------------------------------------
def faithful_forward(x, raw):
    """f32, un-fused eval-mode BatchNorm: mirrors the torch module directly."""
    def bn(h, name):
        g, b, m, v = raw[name]
        return (h - m) / jnp.sqrt(v + BN_EPS) * g + b

    def lin(h, wk, bk):
        return h @ raw[wk].T + raw[bk]

    h = jax.nn.relu(bn(lin(bn(x, "bn_first"), "w_in", "b_in"), "input_bn"))
    h = jax.nn.relu(bn(lin(h, "w1", "b1"), "bn1"))
    h = jax.nn.relu(bn(lin(h, "w2", "b2"), "bn2"))
    cls = bn(lin(h, "w_cls", "b_cls"), "bn_cls")
    alpha = jax.nn.sigmoid(bn(lin(h, "w_a", "b_a"), "bn_a"))
    beta = jax.nn.sigmoid(bn(lin(h, "w_b", "b_b"), "bn_b"))
    gamma = jax.nn.sigmoid(bn(lin(h, "w_g", "b_g"), "bn_g"))
    ab = jax.nn.sigmoid(bn(lin(h, "w_ab", "b_ab"), "bn_ab"))

    idx = jnp.argmax(cls, axis=1, keepdims=True)
    is0, is1 = idx == 0, idx == 1
    beta = jnp.where(is0 | is1, THIRD, beta)
    gamma = jnp.where(is1, THIRD, gamma)
    col = jnp.arange(3)[None, :]
    ab = jnp.where(is0 & (col >= 1), EPS, ab)
    ab = jnp.where(is1 & (col >= 2), EPS, ab)
    return cls, jnp.concatenate([alpha, beta, gamma, ab], axis=1)


def folded_forward(x, folded, bf16_matmuls=True):
    """Reference using the BN-folded params with the kernel's precision policy
    (first layer f32, remaining matmuls optionally bf16 with f32 accumulation)."""
    def mm(h, w, b, cast):          # w: (out, in) f32, b: (out,)
        wt = w.T
        if cast:
            h, wt = h.astype(jnp.bfloat16), wt.astype(jnp.bfloat16)
        return jnp.dot(h, wt, preferred_element_type=jnp.float32) + b[None, :]

    h = jnp.maximum(mm(x, folded["w_in"], folded["b_in"], False), 0.0)
    h = jnp.maximum(mm(h, folded["w1"], folded["b1"], bf16_matmuls), 0.0)
    h = jnp.maximum(mm(h, folded["w2"], folded["b2"], bf16_matmuls), 0.0)
    heads = mm(h, folded["wh"], folded["bh"], bf16_matmuls)               # (N, 16)

    cls = heads[:, 0:3]
    sig = jax.nn.sigmoid(heads)
    alpha, beta, gamma, ab = sig[:, 3:6], sig[:, 6:9], sig[:, 9:12], sig[:, 12:15]

    idx = jnp.argmax(cls, axis=1, keepdims=True)
    is0, is1 = idx == 0, idx == 1
    beta = jnp.where(is0 | is1, THIRD, beta)
    gamma = jnp.where(is1, THIRD, gamma)
    col = jnp.arange(3)[None, :]
    ab = jnp.where(is0 & (col >= 1), EPS, ab)
    ab = jnp.where(is1 & (col >= 2), EPS, ab)
    return cls, jnp.concatenate([alpha, beta, gamma, ab], axis=1)


def assert_outputs_close(cls_a, reg_a, cls_b, reg_b, rtol, atol):
    cls_a, reg_a, cls_b, reg_b = map(np.asarray, (cls_a, reg_a, cls_b, reg_b))
    np.testing.assert_allclose(cls_a, cls_b, rtol=rtol, atol=atol)
    # The regression mask depends on argmax(cls); compare rows where both sides
    # picked the same class so an infinitesimal logit tie can't flip a
    # 1/3-vs-sigmoid branch and spuriously fail the check.
    agree = np.argmax(cls_a, axis=1) == np.argmax(cls_b, axis=1)
    assert agree.mean() > 0.98, "argmax disagreement beyond tie-noise"
    np.testing.assert_allclose(reg_a[agree], reg_b[agree], rtol=rtol, atol=atol)


# ----------------------------------------------------------------------------
if __name__ == "__main__":
    key = jax.random.PRNGKey(0)
    kx, kp = jax.random.split(key)

    DIM = 128
    raw = init_raw_params(kp, dim=DIM)
    folded = fold_params(raw)
    packed = pack_for_kernel(folded)

    # Fold validation (pure JAX, all f32): folded params reproduce the
    # torch-faithful eval-mode BatchNorm math.
    xv = jax.random.normal(kx, (256, 8), jnp.float32)
    assert_outputs_close(*folded_forward(xv, folded, bf16_matmuls=False),
                         *faithful_forward(xv, raw), rtol=1e-4, atol=1e-4)

    # Kernel vs matched-precision reference:
    #   n=8    -> single tiny block (module-consistent small shape)
    #   n=1000 -> one full-batch block (no padding, no extra grid steps)
    #   n=4100 -> 2 grid steps of tile 2560 with a ragged, Pallas-padded tail
    for n in (8, 1000, 4100):
        xb = jax.random.normal(jax.random.fold_in(kx, n), (n, 8), jnp.float32)
        cls_k, reg_k = chain_linear_forward(xb, packed)
        jax.block_until_ready((cls_k, reg_k))
        assert cls_k.shape == (n, 3) and reg_k.shape == (n, 12)
        cls_r, reg_r = folded_forward(xb, folded, bf16_matmuls=True)
        assert_outputs_close(cls_k, reg_k, cls_r, reg_r, rtol=2e-4, atol=2e-4)

    print("KERNEL_OK")
</pallas_src>

<mosaic_0001>
module attributes {stable_mosaic.version = 11 : i64} {
  func.func @chain_linear_kernel(%arg0: i32, %arg1: memref<8x8xf32, #tpu.memory_space<vmem>>, %arg2: memref<8x128xf32, #tpu.memory_space<vmem>>, %arg3: memref<1x128xf32, #tpu.memory_space<vmem>>, %arg4: memref<128x128xbf16, #tpu.memory_space<vmem>>, %arg5: memref<1x128xf32, #tpu.memory_space<vmem>>, %arg6: memref<128x128xbf16, #tpu.memory_space<vmem>>, %arg7: memref<1x128xf32, #tpu.memory_space<vmem>>, %arg8: memref<128x16xbf16, #tpu.memory_space<vmem>>, %arg9: memref<1x16xf32, #tpu.memory_space<vmem>>, %arg10: memref<8x3xf32, #tpu.memory_space<vmem>>, %arg11: memref<8x12xf32, #tpu.memory_space<vmem>>) attributes {dimension_semantics = [#tpu.dimension_semantics<parallel>], iteration_bounds = array<i64: 1>, scalar_prefetch = 0 : i64, scratch_operands = 0 : i64, tpu.core_type = #tpu.core_type<tc>, window_params = [{transform_indices = @transform_0, window_bounds = array<i64: 8, 8>}, {pipeline_mode = #tpu.pipeline_mode<synchronous>, transform_indices = @transform_1, window_bounds = array<i64: 8, 128>}, {pipeline_mode = #tpu.pipeline_mode<synchronous>, transform_indices = @transform_2, window_bounds = array<i64: 1, 128>}, {pipeline_mode = #tpu.pipeline_mode<synchronous>, transform_indices = @transform_3, window_bounds = array<i64: 128, 128>}, {pipeline_mode = #tpu.pipeline_mode<synchronous>, transform_indices = @transform_4, window_bounds = array<i64: 1, 128>}, {pipeline_mode = #tpu.pipeline_mode<synchronous>, transform_indices = @transform_5, window_bounds = array<i64: 128, 128>}, {pipeline_mode = #tpu.pipeline_mode<synchronous>, transform_indices = @transform_6, window_bounds = array<i64: 1, 128>}, {pipeline_mode = #tpu.pipeline_mode<synchronous>, transform_indices = @transform_7, window_bounds = array<i64: 128, 16>}, {pipeline_mode = #tpu.pipeline_mode<synchronous>, transform_indices = @transform_8, window_bounds = array<i64: 1, 16>}, {transform_indices = @transform_9, window_bounds = array<i64: 8, 3>}, {transform_indices = @transform_10, window_bounds = array<i64: 8, 12>}]} {
    %c0 = arith.constant 0 : index
    %c0_0 = arith.constant 0 : index
    %0 = vector.load %arg1[%c0, %c0_0] : memref<8x8xf32, #tpu.memory_space<vmem>>, vector<8x8xf32>
    %c0_1 = arith.constant 0 : index
    %c0_2 = arith.constant 0 : index
    %1 = vector.load %arg2[%c0_1, %c0_2] : memref<8x128xf32, #tpu.memory_space<vmem>>, vector<8x128xf32>
    %cst = arith.constant dense<0.000000e+00> : vector<8x128xf32>
    %2 = tpu.matmul %0, %1, %cst {dimension_numbers = #tpu.dot_dimension_numbers<[1], [0], [0], [1], [0, 0, 1, 1], [], []>} : vector<8x8xf32>, vector<8x128xf32>, vector<8x128xf32> -> vector<8x128xf32>
    %c0_3 = arith.constant 0 : index
    %c0_4 = arith.constant 0 : index
    %3 = vector.load %arg3[%c0_3, %c0_4] : memref<1x128xf32, #tpu.memory_space<vmem>>, vector<1x128xf32>
    %4 = vector.broadcast %3 : vector<1x128xf32> to vector<8x128xf32>
    %5 = arith.addf %2, %4 : vector<8x128xf32>
    %cst_5 = arith.constant 0.000000e+00 : f32
    %6 = vector.broadcast %cst_5 : f32 to vector<8x128xf32>
    %7 = arith.maximumf %5, %6 : vector<8x128xf32>
    %8 = arith.truncf %7 : vector<8x128xf32> to vector<8x128xbf16>
    %c0_6 = arith.constant 0 : index
    %c0_7 = arith.constant 0 : index
    %9 = vector.load %arg4[%c0_6, %c0_7] : memref<128x128xbf16, #tpu.memory_space<vmem>>, vector<128x128xbf16>
    %cst_8 = arith.constant dense<0.000000e+00> : vector<8x128xf32>
    %10 = tpu.matmul %8, %9, %cst_8 {dimension_numbers = #tpu.dot_dimension_numbers<[1], [0], [0], [1], [0, 0, 1, 1], [], []>} : vector<8x128xbf16>, vector<128x128xbf16>, vector<8x128xf32> -> vector<8x128xf32>
    %c0_9 = arith.constant 0 : index
    %c0_10 = arith.constant 0 : index
    %11 = vector.load %arg5[%c0_9, %c0_10] : memref<1x128xf32, #tpu.memory_space<vmem>>, vector<1x128xf32>
    %12 = vector.broadcast %11 : vector<1x128xf32> to vector<8x128xf32>
    %13 = arith.addf %10, %12 : vector<8x128xf32>
    %cst_11 = arith.constant 0.000000e+00 : f32
    %14 = vector.broadcast %cst_11 : f32 to vector<8x128xf32>
    %15 = arith.maximumf %13, %14 : vector<8x128xf32>
    %16 = arith.truncf %15 : vector<8x128xf32> to vector<8x128xbf16>
    %c0_12 = arith.constant 0 : index
    %c0_13 = arith.constant 0 : index
    %17 = vector.load %arg6[%c0_12, %c0_13] : memref<128x128xbf16, #tpu.memory_space<vmem>>, vector<128x128xbf16>
    %cst_14 = arith.constant dense<0.000000e+00> : vector<8x128xf32>
    %18 = tpu.matmul %16, %17, %cst_14 {dimension_numbers = #tpu.dot_dimension_numbers<[1], [0], [0], [1], [0, 0, 1, 1], [], []>} : vector<8x128xbf16>, vector<128x128xbf16>, vector<8x128xf32> -> vector<8x128xf32>
    %c0_15 = arith.constant 0 : index
    %c0_16 = arith.constant 0 : index
    %19 = vector.load %arg7[%c0_15, %c0_16] : memref<1x128xf32, #tpu.memory_space<vmem>>, vector<1x128xf32>
    %20 = vector.broadcast %19 : vector<1x128xf32> to vector<8x128xf32>
    %21 = arith.addf %18, %20 : vector<8x128xf32>
    %cst_17 = arith.constant 0.000000e+00 : f32
    %22 = vector.broadcast %cst_17 : f32 to vector<8x128xf32>
    %23 = arith.maximumf %21, %22 : vector<8x128xf32>
    %24 = arith.truncf %23 : vector<8x128xf32> to vector<8x128xbf16>
    %c0_18 = arith.constant 0 : index
    %c0_19 = arith.constant 0 : index
    %25 = vector.load %arg8[%c0_18, %c0_19] : memref<128x16xbf16, #tpu.memory_space<vmem>>, vector<128x16xbf16>
    %cst_20 = arith.constant dense<0.000000e+00> : vector<8x16xf32>
    %26 = tpu.matmul %24, %25, %cst_20 {dimension_numbers = #tpu.dot_dimension_numbers<[1], [0], [0], [1], [0, 0, 1, 1], [], []>} : vector<8x128xbf16>, vector<128x16xbf16>, vector<8x16xf32> -> vector<8x16xf32>
    %c0_21 = arith.constant 0 : index
    %c0_22 = arith.constant 0 : index
    %27 = vector.load %arg9[%c0_21, %c0_22] : memref<1x16xf32, #tpu.memory_space<vmem>>, vector<1x16xf32>
    %28 = vector.broadcast %27 : vector<1x16xf32> to vector<8x16xf32>
    %29 = arith.addf %26, %28 : vector<8x16xf32>
    %30 = vector.extract_strided_slice %29 {offsets = [0, 0], sizes = [8, 1], strides = [1, 1]} : vector<8x16xf32> to vector<8x1xf32>
    %31 = vector.extract_strided_slice %29 {offsets = [0, 1], sizes = [8, 1], strides = [1, 1]} : vector<8x16xf32> to vector<8x1xf32>
    %32 = vector.extract_strided_slice %29 {offsets = [0, 2], sizes = [8, 1], strides = [1, 1]} : vector<8x16xf32> to vector<8x1xf32>
    %33 = arith.cmpf oge, %30, %31 : vector<8x1xf32>
    %34 = arith.cmpf oge, %30, %32 : vector<8x1xf32>
    %35 = arith.andi %33, %34 : vector<8x1xi1>
    %cst_23 = arith.constant dense<true> : vector<8x1xi1>
    %36 = arith.xori %35, %cst_23 : vector<8x1xi1>
    %37 = arith.cmpf oge, %31, %32 : vector<8x1xf32>
    %38 = arith.andi %36, %37 : vector<8x1xi1>
    %39 = arith.ori %35, %38 : vector<8x1xi1>
    %40 = tpu.iota {dimensions = array<i32: 1>} : vector<8x16xi32>
    %41 = arith.negf %29 : vector<8x16xf32>
    %42 = math.exp %41 : vector<8x16xf32>
    %cst_24 = arith.constant 1.000000e+00 : f32
    %43 = vector.broadcast %cst_24 : f32 to vector<8x16xf32>
    %44 = arith.addf %43, %42 : vector<8x16xf32>
    %45 = arith.divf %43, %44 : vector<8x16xf32>
    %c3_i32 = arith.constant 3 : i32
    %46 = vector.broadcast %c3_i32 : i32 to vector<8x16xi32>
    %47 = arith.cmpi slt, %40, %46 : vector<8x16xi32>
    %48 = arith.select %47, %29, %45 : vector<8x16xi1>, vector<8x16xf32>
    %c6_i32 = arith.constant 6 : i32
    %49 = vector.broadcast %c6_i32 : i32 to vector<8x16xi32>
    %50 = arith.cmpi sge, %40, %49 : vector<8x16xi32>
    %c9_i32 = arith.constant 9 : i32
    %51 = vector.broadcast %c9_i32 : i32 to vector<8x16xi32>
    %52 = arith.cmpi slt, %40, %51 : vector<8x16xi32>
    %53 = arith.andi %50, %52 : vector<8x16xi1>
    %54 = vector.broadcast %39 : vector<8x1xi1> to vector<8x16xi1>
    %55 = arith.andi %53, %54 : vector<8x16xi1>
    %cst_25 = arith.constant 0.333333343 : f32
    %56 = vector.broadcast %cst_25 : f32 to vector<8x16xf32>
    %57 = arith.select %55, %56, %48 : vector<8x16xi1>, vector<8x16xf32>
    %c9_i32_26 = arith.constant 9 : i32
    %58 = vector.broadcast %c9_i32_26 : i32 to vector<8x16xi32>
    %59 = arith.cmpi sge, %40, %58 : vector<8x16xi32>
    %c12_i32 = arith.constant 12 : i32
    %60 = vector.broadcast %c12_i32 : i32 to vector<8x16xi32>
    %61 = arith.cmpi slt, %40, %60 : vector<8x16xi32>
    %62 = arith.andi %59, %61 : vector<8x16xi1>
    %63 = vector.broadcast %38 : vector<8x1xi1> to vector<8x16xi1>
    %64 = arith.andi %62, %63 : vector<8x16xi1>
    %cst_27 = arith.constant 0.333333343 : f32
    %65 = vector.broadcast %cst_27 : f32 to vector<8x16xf32>
    %66 = arith.select %64, %65, %57 : vector<8x16xi1>, vector<8x16xf32>
    %c13_i32 = arith.constant 13 : i32
    %67 = vector.broadcast %c13_i32 : i32 to vector<8x16xi32>
    %68 = arith.cmpi sge, %40, %67 : vector<8x16xi32>
    %c15_i32 = arith.constant 15 : i32
    %69 = vector.broadcast %c15_i32 : i32 to vector<8x16xi32>
    %70 = arith.cmpi slt, %40, %69 : vector<8x16xi32>
    %71 = arith.andi %68, %70 : vector<8x16xi1>
    %72 = vector.broadcast %35 : vector<8x1xi1> to vector<8x16xi1>
    %73 = arith.andi %71, %72 : vector<8x16xi1>
    %cst_28 = arith.constant 1.000000e-10 : f32
    %74 = vector.broadcast %cst_28 : f32 to vector<8x16xf32>
    %75 = arith.select %73, %74, %66 : vector<8x16xi1>, vector<8x16xf32>
    %c14_i32 = arith.constant 14 : i32
    %76 = vector.broadcast %c14_i32 : i32 to vector<8x16xi32>
    %77 = arith.cmpi eq, %40, %76 : vector<8x16xi32>
    %78 = vector.broadcast %38 : vector<8x1xi1> to vector<8x16xi1>
    %79 = arith.andi %77, %78 : vector<8x16xi1>
    %cst_29 = arith.constant 1.000000e-10 : f32
    %80 = vector.broadcast %cst_29 : f32 to vector<8x16xf32>
    %81 = arith.select %79, %80, %75 : vector<8x16xi1>, vector<8x16xf32>
    %82 = vector.extract_strided_slice %81 {offsets = [0, 0], sizes = [8, 3], strides = [1, 1]} : vector<8x16xf32> to vector<8x3xf32>
    %c0_30 = arith.constant 0 : index
    %c0_31 = arith.constant 0 : index
    %83 = vector.load %arg10[%c0_30, %c0_31] : memref<8x3xf32, #tpu.memory_space<vmem>>, vector<8x3xf32>
    tpu.vector_store %arg10[%c0_30, %c0_31], %82 {strides = array<i32>} : memref<8x3xf32, #tpu.memory_space<vmem>>, vector<8x3xf32>,
    %84 = vector.extract_strided_slice %81 {offsets = [0, 3], sizes = [8, 12], strides = [1, 1]} : vector<8x16xf32> to vector<8x12xf32>
    %c0_32 = arith.constant 0 : index
    %c0_33 = arith.constant 0 : index
    %85 = vector.load %arg11[%c0_32, %c0_33] : memref<8x12xf32, #tpu.memory_space<vmem>>, vector<8x12xf32>
    tpu.vector_store %arg11[%c0_32, %c0_33], %84 {strides = array<i32>} : memref<8x12xf32, #tpu.memory_space<vmem>>, vector<8x12xf32>,
    return
  }
  func.func @transform_0(%arg0: i32) -> (i32, i32) {
    %c0_i32 = arith.constant 0 : i32
    %c0_i32_0 = arith.constant 0 : i32
    return %arg0, %c0_i32 : i32, i32
  }
  func.func @transform_1(%arg0: i32) -> (i32, i32) {
    %c0_i32 = arith.constant 0 : i32
    %c0_i32_0 = arith.constant 0 : i32
    %c0_i32_1 = arith.constant 0 : i32
    return %c0_i32, %c0_i32_0 : i32, i32
  }
  func.func @transform_2(%arg0: i32) -> (i32, i32) {
    %c0_i32 = arith.constant 0 : i32
    %c0_i32_0 = arith.constant 0 : i32
    %c0_i32_1 = arith.constant 0 : i32
    return %c0_i32, %c0_i32_0 : i32, i32
  }
  func.func @transform_3(%arg0: i32) -> (i32, i32) {
    %c0_i32 = arith.constant 0 : i32
    %c0_i32_0 = arith.constant 0 : i32
    %c0_i32_1 = arith.constant 0 : i32
    return %c0_i32, %c0_i32_0 : i32, i32
  }
  func.func @transform_4(%arg0: i32) -> (i32, i32) {
    %c0_i32 = arith.constant 0 : i32
    %c0_i32_0 = arith.constant 0 : i32
    %c0_i32_1 = arith.constant 0 : i32
    return %c0_i32, %c0_i32_0 : i32, i32
  }
  func.func @transform_5(%arg0: i32) -> (i32, i32) {
    %c0_i32 = arith.constant 0 : i32
    %c0_i32_0 = arith.constant 0 : i32
    %c0_i32_1 = arith.constant 0 : i32
    return %c0_i32, %c0_i32_0 : i32, i32
  }
  func.func @transform_6(%arg0: i32) -> (i32, i32) {
    %c0_i32 = arith.constant 0 : i32
    %c0_i32_0 = arith.constant 0 : i32
    %c0_i32_1 = arith.constant 0 : i32
    return %c0_i32, %c0_i32_0 : i32, i32
  }
  func.func @transform_7(%arg0: i32) -> (i32, i32) {
    %c0_i32 = arith.constant 0 : i32
    %c0_i32_0 = arith.constant 0 : i32
    %c0_i32_1 = arith.constant 0 : i32
    return %c0_i32, %c0_i32_0 : i32, i32
  }
  func.func @transform_8(%arg0: i32) -> (i32, i32) {
    %c0_i32 = arith.constant 0 : i32
    %c0_i32_0 = arith.constant 0 : i32
    %c0_i32_1 = arith.constant 0 : i32
    return %c0_i32, %c0_i32_0 : i32, i32
  }
  func.func @transform_9(%arg0: i32) -> (i32, i32) {
    %c0_i32 = arith.constant 0 : i32
    %c0_i32_0 = arith.constant 0 : i32
    return %arg0, %c0_i32 : i32, i32
  }
  func.func @transform_10(%arg0: i32) -> (i32, i32) {
    %c0_i32 = arith.constant 0 : i32
    %c0_i32_0 = arith.constant 0 : i32
    return %arg0, %c0_i32 : i32, i32
  }
}

</mosaic_0001>

<bundles_post_ra>
// kernel: _chain_linear_call.1
= control target key start
LH: loop header
LB: loop body
LE: loop exit
PB: predicated region body
PF: predicated region fallthrough
CT: control target
= control target key end

     0   :  { %16 = vsyncpa [#allocation3], 0  ;;  %s1019_s0 = inlined_call_operand.vmem [shape: f32[8,8], index: 0, kind: input, shape index: {}]   ;;  %s1020_s1 = inlined_call_operand.hbm [shape: f32[8,128], index: 1, kind: input, shape index: {}]   ;;  %s1021_s2 = inlined_call_operand.vmem [shape: f32[1,128], index: 2, kind: input, shape index: {}]   ;;  %s1022_s3 = inlined_call_operand.vmem [shape: bf16[128,128], index: 3, kind: input, shape index: {}]   ;;  %s1023_s4 = inlined_call_operand.vmem [shape: f32[1,128], index: 4, kind: input, shape index: {}]   ;;  %s1024_s5 = inlined_call_operand.hbm [shape: bf16[128,128], index: 5, kind: input, shape index: {}]   ;;  %s1025_s6 = inlined_call_operand.vmem [shape: f32[1,128], index: 6, kind: input, shape index: {}]   ;;  %s1026_s7 = inlined_call_operand.vmem [shape: bf16[128,16], index: 7, kind: input, shape index: {}]   ;;  %s1027_s8 = inlined_call_operand.vmem [shape: f32[1,16], index: 8, kind: input, shape index: {}]   ;;  %s1028_s9 = inlined_call_operand.vmem [shape: f32[8,3], index: 9, kind: output, shape index: {0}]   ;;  %s1029_s10 = inlined_call_operand.hbm [shape: f32[8,12], index: 10, kind: output, shape index: {1}]  }
   0x1   :  { %17 = vsyncpa [#allocation6], 0 }
   0x2   :  { %18 = vsyncpa [#allocation4], 0  ;;  %s810_s13 = smov [#allocation2]   ;;  %s811_s15 = smov [#allocation5]  }
   0x3   :  { %s27_s14 = sshll.u32 %s810_s13, 4  ;;  %s42_s16 = sshll.u32 %s811_s15, 4  ;;  %s28_s14 = int_to_ptr.vmem [resolvable:$true] %s27_s14  ;;  %s877_s16 = int_to_ptr.vmem [resolvable:$true] %s42_s16 }
   0x4   :  { %s738_s19 = scalar_lea.hbm %s1020_s1, 128 }
   0x5   :  { %p739_p0 = scmp.ne.s32.totalorder %s1020_s1, %s738_s19  ;;  %p742_p1 = scmp.lt.u32.totalorder %s738_s19, %s1020_s1 }
   0x7   :  { %p744_p2 = pnand %p742_p1, %p739_p0 }
   0x9   :  { %747 = shalt.err (!%p744_p2)
}
   0xa   :  { %s748_s24 = scalar_lea.vmem %s28_s14, 128  ;;  %p753_p4 = scmp.lt.s32.totalorder %s28_s14, %s28_s14 }
   0xb   :  { %p749_p3 = scmp.ne.s32.totalorder %s28_s14, %s748_s24  ;;  %p754_p5 = scmp.lt.s32.totalorder %s748_s24, %s748_s24 }
   0xd   :  { %p755_p6 = por %p754_p5, %p753_p4 }
   0xf   :  { %p756_p7 = pnand %p755_p6, %p749_p3 }
  0x11   :  { %759 = shalt.err (!%p756_p7)
}
  0x12   :  { %30 = dma.hbm_to_vmem [thread:$0]  %s1020_s1, 128, %s28_s14, [#allocation3]  }
  0x13   :  { %s760_s29 = scalar_lea.hbm %s1024_s5, 1024 }
  0x14   :  { %p761_p8 = scmp.ne.s32.totalorder %s1024_s5, %s760_s29  ;;  %p764_p9 = scmp.lt.u32.totalorder %s760_s29, %s1024_s5 }
  0x16   :  { %p766_p10 = pnand %p764_p9, %p761_p8 }
  0x18   :  { %769 = shalt.err (!%p766_p10)
}
  0x19   :  { %s770_s15 = scalar_lea.vmem %s877_s16, 1024  ;;  %p775_p12 = scmp.lt.s32.totalorder %s877_s16, %s877_s16 }
  0x1a   :  { %p771_p11 = scmp.ne.s32.totalorder %s877_s16, %s770_s15  ;;  %p776_p13 = scmp.lt.s32.totalorder %s770_s15, %s770_s15 }
  0x1c   :  { %p777_p0 = por %p776_p13, %p775_p12 }
  0x1e   :  { %p778_p1 = pnand %p777_p0, %p771_p11 }
  0x20   :  { %781 = shalt.err (!%p778_p1)
}
  0x21   :  { %s812_s1 = smov 64   ;;  %s813_s14 = smov 4  }
  0x22   :  { %48 = dma.hbm_to_vmem [thread:$0]  %s1024_s5, 1024, %s877_s16, [#allocation6], %s812_s1, %s812_s1, %s813_s14  }
  0x23   :  { %804 = dma.done.wait [#allocation3], 128  }
  0x24   :  { %805 = vsyncadd [#allocation3], 4294967168 }
  0x25   :  { %806 = dma.done.wait [#allocation6], 1024  }
  0x26   :  { %807 = vsyncadd [#allocation6], 4294966272  ;;  %v814_v0 = vmov 0.0   ;;  %vm815_vm0 = vmmov 0   ;;  %vm71_vm1 = vcmask 64512   ;;  %v63_v1 = vld [vmem:[#allocation2] sm:$0xff] }
  0x27   :  { %631 = vmatprep.subr.mxu0 %v814_v0  ;;  %633 = vmatprep.mubr.msk.f32.mxu0 %vm815_vm0, %v814_v0  ;;  %v62_v2 = vld [vmem:[%s1019_s0] sm:$0xff]  ;;  %v711_v4 = vld [vmem:[%s1022_s3 + $0x8] sm:$0xff]   ;;  %v712_v5 = vld [vmem:[%s1022_s3 + $0x10] sm:$0xff]   ;;  %v816_v49 = vmov 0   ;;  %vm819_vm5 = vmmov 1  }
  0x28   :  { %636 = vmatprep.subr.bf16.mxu1 %v814_v0  ;;  %652 = vmatprep.mubr.msk.bf16.mxu1 %vm815_vm0, %v814_v0  ;;  %v710_v3 = vld [vmem:[%s1022_s3] sm:$0xff]   ;;  %v713_v6 = vld [vmem:[%s1022_s3 + $0x18] sm:$0xff]   ;;  %v715_v8 = vld [vmem:[%s1022_s3 + $0x28] sm:$0xff]  }
  0x29   :  { %632 = vmatpush3.msra.mxu0 %v63_v1  ;;  %637 = vmatpush3.bf16.msra.mxu1 %v710_v3  ;;  %v714_v7 = vld [vmem:[%s1022_s3 + $0x20] sm:$0xff]   ;;  %v716_v9 = vld [vmem:[%s1022_s3 + $0x30] sm:$0xff]   ;;  %v717_v10 = vld [vmem:[%s1022_s3 + $0x38] sm:$0xff]   ;;  %s821_s3 = smov [#allocation7]  }
  0x2a   :  { %634 = vmatmul.mubr.msk.f32.vlgmr.msra.gmra.mrb[0].mxu0 %vm71_vm1, %v62_v2  ;;  %656 = vmatprep.subr.bf16.mxu0 %v814_v0  ;;  %v718_v11 = vld [vmem:[#allocation5] sm:$0xff]   ;;  %v719_v12 = vld [vmem:[#allocation5 + $0x8] sm:$0xff]   ;;  %v720_v13 = vld [vmem:[#allocation5 + $0x10] sm:$0xff]   ;;  %v501_v2 = vlaneseq  ;;  %s560_s15 = sshll.u32 %s821_s3, 4  ;;  %s561_s15 = int_to_ptr.vmem [resolvable:$true] %s560_s15 }
  0x2b   :  { %672 = vmatprep.mubr.msk.bf16.mxu0 %vm815_vm0, %v814_v0  ;;  %638 = vmatprep.subr.bf16.mxu1 %v814_v0  ;;  %v721_v14 = vld [vmem:[#allocation5 + $0x18] sm:$0xff]   ;;  %v722_v15 = vld [vmem:[#allocation5 + $0x20] sm:$0xff]   ;;  %v723_v16 = vld [vmem:[#allocation5 + $0x28] sm:$0xff]   ;;  %s782_s1 = scalar_lea.vmem %s561_s15, 128  ;;  %p787_p3 = scmp.lt.s32.totalorder %s561_s15, %s561_s15 }
  0x2c   :  { %657 = vmatpush3.bf16.msra.mxu0 %v718_v11  ;;  %v572_v17 = vld [vmem:[%s1021_s2] ss:$0 sm:$0xff]  ;;  %v724_v23 = vld [vmem:[#allocation5 + $0x30] sm:$0xff]   ;;  %v727_v26 = vld [vmem:[%s1026_s7 + $0x8] sm:$0xff]   ;;  %709 = vset.pattern.permute.xlu0 %v816_v49  ;;  %v502_v3 = vand.u32 127, %v501_v2  ;;  %p783_p2 = scmp.ne.s32.totalorder %s561_s15, %s782_s1  ;;  %p788_p4 = scmp.lt.s32.totalorder %s782_s1, %s782_s1 }
  0x2d   :  { %639 = vmatpush3.bf16.msra.mxu1 %v711_v4  ;;  %658 = vmatprep.subr.bf16.mxu0 %v814_v0  ;;  %v725_v24 = vld [vmem:[#allocation5 + $0x38] sm:$0xff]   ;;  %v728_v27 = vld [vmem:[%s1026_s7 + $0x10] sm:$0xff]   ;;  %v729_v28 = vld [vmem:[%s1026_s7 + $0x18] sm:$0xff]  }
  0x2e   :  { %640 = vmatprep.subr.bf16.mxu1 %v814_v0  ;;  %v726_v25 = vld [vmem:[%s1026_s7] sm:$0xff]   ;;  %v731_v30 = vld [vmem:[%s1026_s7 + $0x28] sm:$0xff]   ;;  %v732_v39 = vld [vmem:[%s1026_s7 + $0x30] sm:$0xff]   ;;  %708 = vset.pattern.permute.xlu1 %v816_v49  ;;  %vm511_vm10 = vcmp.ge.s32.totalorder %v502_v3, 6  ;;  %vm512_vm11 = vcmp.lt.s32.totalorder %v502_v3, 9  ;;  %vm521_vm12 = vcmp.ge.s32.totalorder %v502_v3, 9  ;;  %p789_p5 = por %p788_p4, %p787_p3 }
  0x2f   :  { %v730_v29 = vld [vmem:[%s1026_s7 + $0x20] sm:$0xff]   ;;  %v733_v40 = vld [vmem:[%s1026_s7 + $0x38] sm:$0xff]   ;;  %s818_s7 = smov 126   ;;  %vm522_vm13 = vcmp.lt.s32.totalorder %v502_v3, 12  ;;  %vm531_vm14 = vcmp.ge.s32.totalorder %v502_v3, 13  ;;  %vm532_vm15 = vcmp.lt.s32.totalorder %v502_v3, 15  ;;  %vm513_vm1 = vmand %vm511_vm10, %vm512_vm11 }
  0x30   :  { %659 = vmatpush3.bf16.msra.mxu0 %v719_v12  ;;  %v574_v31 = vld [vmem:[%s1023_s4] ss:$0 sm:$0xff]  ;;  %vm544_vm11 = vcmask 23552   ;;  %p790_p6 = pnand %p789_p5, %p783_p2 }
  0x31   :  { %641 = vmatpush3.bf16.msra.mxu1 %v712_v5  ;;  %660 = vmatprep.subr.bf16.mxu0 %v814_v0  ;;  %v583_v41 = vld [vmem:[%s1025_s6] ss:$0 sm:$0xff]  ;;  %s817_s6 = smov 127  }
  0x32   :  { %642 = vmatprep.subr.bf16.mxu1 %v814_v0  ;;  %v592_v50 = vld [vmem:[%s1027_s8] ss:$0 sm:$0xff]  ;;  %s820_s8 = smov 125  }
  0x34   :  { %661 = vmatpush3.bf16.msra.mxu0 %v720_v13 }
  0x35   :  { %643 = vmatpush3.bf16.msra.mxu1 %v713_v6  ;;  %662 = vmatprep.subr.bf16.mxu0 %v814_v0 }
  0x36   :  { %644 = vmatprep.subr.bf16.mxu1 %v814_v0 }
  0x38   :  { %663 = vmatpush3.bf16.msra.mxu0 %v721_v14 }
  0x39   :  { %645 = vmatpush3.bf16.msra.mxu1 %v714_v7  ;;  %664 = vmatprep.subr.bf16.mxu0 %v814_v0 }
  0x3a   :  { %646 = vmatprep.subr.bf16.mxu1 %v814_v0 }
  0x3c   :  { %665 = vmatpush3.bf16.msra.mxu0 %v722_v15 }
  0x3d   :  { %647 = vmatpush3.bf16.msra.mxu1 %v715_v8  ;;  %666 = vmatprep.subr.bf16.mxu0 %v814_v0 }
  0x3e   :  { %648 = vmatprep.subr.bf16.mxu1 %v814_v0 }
  0x40   :  { %667 = vmatpush3.bf16.msra.mxu0 %v723_v16 }
  0x41   :  { %649 = vmatpush3.bf16.msra.mxu1 %v716_v9  ;;  %668 = vmatprep.subr.bf16.mxu0 %v814_v0 }
  0x42   :  { %650 = vmatprep.subr.bf16.mxu1 %v814_v0 }
  0x44   :  { %669 = vmatpush3.bf16.msra.mxu0 %v724_v23 }
  0x45   :  { %651 = vmatpush3.bf16.msra.mxu1 %v717_v10  ;;  %670 = vmatprep.subr.bf16.mxu0 %v814_v0 }
  0x46   :  { %676 = vmatprep.subr.bf16.mxu1 %v814_v0 }
  0x48   :  { %671 = vmatpush3.bf16.msra.mxu0 %v725_v24 }
  0xfd   :  { %v141_v18 = vpop.f32.mrb[0].mxu0 }
  0xfe   :  { %v142_v19 = vadd.f32 %v572_v17, %v141_v18  ;;  %v635_v20 = vpop.f32.mrb[1].mxu0 }
 0x100   :  { %v145_v21 = vmax.f32 %v142_v19, 0.0 }
 0x102   :  { %v146_v22 = vpack.c.bf16 %v145_v21, %v145_v21 }
 0x104   :  { %653 = vmatmul.mubr.bf16.vlgmr.msra.gmra.mrb[0].mxu1 %v146_v22 }
 0x105   :  { %692 = vmatprep.mubr.msk.bf16.mxu1 %vm815_vm0, %v814_v0  ;;  %677 = vmatpush3.bf16.msra.mxu1 %v726_v25  ;;  %vm509_vm0 = vcmp.lt.s32.totalorder %v502_v3, 3 }
 0x106   :  { %678 = vmatprep.subr.bf16.mxu1 %v814_v0 }
 0x109   :  { %679 = vmatpush3.bf16.msra.mxu1 %v727_v26 }
 0x10a   :  { %680 = vmatprep.subr.bf16.mxu1 %v814_v0 }
 0x10d   :  { %681 = vmatpush3.bf16.msra.mxu1 %v728_v27 }
 0x10e   :  { %682 = vmatprep.subr.bf16.mxu1 %v814_v0 }
 0x111   :  { %683 = vmatpush3.bf16.msra.mxu1 %v729_v28 }
 0x112   :  { %684 = vmatprep.subr.bf16.mxu1 %v814_v0 }
 0x115   :  { %685 = vmatpush3.bf16.msra.mxu1 %v730_v29 }
 0x116   :  { %686 = vmatprep.subr.bf16.mxu1 %v814_v0 }
 0x119   :  { %687 = vmatpush3.bf16.msra.mxu1 %v731_v30 }
 0x11a   :  { %688 = vmatprep.subr.bf16.mxu1 %v814_v0 }
 0x11d   :  { %689 = vmatpush3.bf16.msra.mxu1 %v732_v39 }
 0x11e   :  { %690 = vmatprep.subr.bf16.mxu1 %v814_v0 }
 0x121   :  { %691 = vmatpush3.bf16.msra.mxu1 %v733_v40 }
 0x1d7   :  { %v252_v32 = vpop.f32.mrb[0].mxu1 }
 0x1d8   :  { %v253_v33 = vadd.f32 %v574_v31, %v252_v32  ;;  %v654_v34 = vpop.f32.mrb[1].mxu1 }
 0x1d9   :  { %v255_v35 = vpop.f32.mrb[2].mxu1 }
 0x1da   :  { %v258_v36 = vmax.f32 %v253_v33, 0.0  ;;  %v655_v37 = vpop.f32.mrb[3].mxu1 }
 0x1dc   :  { %v259_v38 = vpack.c.bf16 %v258_v36, %v258_v36 }
 0x1de   :  { %673 = vmatmul.mubr.bf16.vlgmr.msra.gmra.mrb[4].mxu0 %v259_v38 }
 0x2b1   :  { %v365_v42 = vpop.f32.mrb[4].mxu0 }
 0x2b2   :  { %v366_v43 = vadd.f32 %v583_v41, %v365_v42  ;;  %v674_v44 = vpop.f32.mrb[5].mxu0 }
 0x2b3   :  { %v368_v45 = vpop.f32.mrb[6].mxu0 }
 0x2b4   :  { %v371_v46 = vmax.f32 %v366_v43, 0.0  ;;  %v675_v47 = vpop.f32.mrb[7].mxu0 }
 0x2b6   :  { %v372_v48 = vpack.c.bf16 %v371_v46, %v371_v46 }
 0x2b8   :  { %693 = vmatmul.mubr.bf16.vlgmr.msra.gmra.mrb[4].mxu1 %v372_v48 }
 0x38b   :  { %v478_v51 = vpop.f32.mrb[4].mxu1 }
 0x38c   :  { %v479_v52 = vadd.f32 %v592_v50, %v478_v51  ;;  %v694_v53 = vpop.f32.mrb[5].mxu1 }
 0x38d   :  { %v481_v54 = vpop.f32.mrb[6].mxu1 }
 0x38e   :  { %485 = vrot.lane.b32.xlu0 %v479_v52, %s817_s6  ;;  %v695_v55 = vpop.f32.mrb[7].mxu1  ;;  %v601_v63 = vmul.f32 -1.442695, %v479_v52 }
 0x390   :  { %734 = vpow2.f32 %v601_v63 }
 0x392   :  { %489 = vrot.lane.b32.xlu0 %v479_v52, %s818_s7 }
 0x39a   :  { %v735_v0 = vpop.eup %734 }
 0x39b   :  { %v506_v1 = vadd.f32 1.0, %v735_v0 }
 0x39d   :  { %736 = vrcp.f32 %v506_v1 }
 0x3a7   :  { %v737_v5 = vpop.eup %736 }
 0x3a8   :  { %v510_v7 = vsel %vm509_vm0, %v479_v52, %v737_v5 }
 0x400   :  { %v486_v56 = vpop.permute.xlu0 %485 }
 0x401   :  { %vm488_vm2 = vcmp.ge.f32.partialorder %v479_v52, %v486_v56 }
 0x402   :  { %v495_v57 = vsel %vm488_vm2, 1, %v816_v49 }
 0x403   :  { %496 = vrot.lane.b32.xlu1 %v495_v57, %s817_s6 }
 0x404   :  { %v490_v58 = vpop.permute.xlu0 %489 }
 0x405   :  { %vm492_vm3 = vcmp.ge.f32.partialorder %v479_v52, %v490_v58 }
 0x406   :  { %vm493_vm4 = vmand %vm488_vm2, %vm492_vm3 }
 0x407   :  { %vm494_vm6 = vmxor %vm493_vm4, %vm819_vm5  ;;  %v534_v62 = vsel %vm493_vm4, 1, %v816_v49 }
 0x408   :  { %vm523_vm2 = vmand %vm521_vm12, %vm522_vm13  ;;  %vm550_vm13 = vcmask 97280  }
 0x409   :  { %vm533_vm5 = vmand %vm531_vm14, %vm532_vm15 }
 0x475   :  { %v497_v59 = vpop.permute.xlu1 %496 }
 0x476   :  { %vm498_vm7 = vcmp.ne.s32.totalorder %v497_v59, 0 }
 0x477   :  { %vm499_vm8 = vmand %vm494_vm6, %vm498_vm7  ;;  %vm541_vm7 = vcmp.eq.s32.totalorder %v502_v3, 14 }
 0x478   :  { %vm500_vm9 = vmor %vm493_vm4, %vm499_vm8  ;;  %v524_v60 = vsel %vm499_vm8, 1, %v816_v49 }
 0x479   :  { %526 = vperm.xlu0 %709, %v524_v60   ;;  %v514_v61 = vsel %vm500_vm9, 1, %v816_v49 }
 0x47a   :  { %516 = vperm.xlu1 %708, %v514_v61  }
 0x47e   :  { %536 = vperm.xlu1 %708, %v534_v62  }
 0x4f8   :  { %v527_v4 = vpop.permute.xlu0 %526 }
 0x4f9   :  { %v517_v6 = vpop.permute.xlu1 %516  ;;  %vm528_vm4 = vcmp.eq.s32.totalorder %v527_v4, 1 }
 0x4fa   :  { %vm518_vm3 = vcmp.eq.s32.totalorder %v517_v6, 1  ;;  %vm529_vm8 = vmand %vm523_vm2, %vm528_vm4 }
 0x4fb   :  { %vm519_vm6 = vmand %vm513_vm1, %vm518_vm3 }
 0x4fc   :  { %v520_v8 = vsel %vm519_vm6, 0.33333334, %v510_v7  ;;  %vm542_vm12 = vmand %vm541_vm7, %vm528_vm4 }
 0x4fd   :  { %v537_v9 = vpop.permute.xlu1 %536  ;;  %v530_v10 = vsel %vm529_vm8, 0.33333334, %v520_v8 }
 0x4fe   :  { %vm538_vm9 = vcmp.eq.s32.totalorder %v537_v9, 1 }
 0x4ff   :  { %vm539_vm10 = vmand %vm533_vm5, %vm538_vm9 }
 0x500   :  { %v540_v11 = vsel %vm539_vm10, 1e-10, %v530_v10 }
 0x501   :  { %v543_v12 = vsel %vm542_vm12, 1e-10, %v540_v11 }
 0x502   :  { %547 = vrot.lane.b32.xlu1 %v543_v12, %s820_s8  ;;  %545 = vst.msk [vmem:[%s1028_s9] sm:$0xff] %vm544_vm11, %v543_v12 }
 0x574   :  { %v548_v13 = vpop.permute.xlu1 %547 }
 0x575   :  { %551 = vst.msk [vmem:[#allocation7] sm:$0xff] %vm550_vm13, %v548_v13 }
 0x576   :  { %793 = shalt.err (!%p790_p6)
}
 0x577   :  { %s794_s17 = scalar_lea.hbm %s1029_s10, 128 }
 0x578   :  { %p795_p7 = scmp.ne.s32.totalorder %s1029_s10, %s794_s17  ;;  %p798_p8 = scmp.lt.u32.totalorder %s794_s17, %s1029_s10 }
 0x57a   :  { %p800_p9 = pnand %p798_p8, %p795_p7 }
 0x57c   :  { %803 = shalt.err (!%p800_p9)
}
 0x57d   :  { %563 = dma.vmem_to_hbm [thread:$0]  %s561_s15, 128, %s1029_s10, [#allocation4]  }
 0x57e   :  { %808 = dma.done.wait [#allocation4], 128  }
 0x57f   :  { %809 = vsyncadd [#allocation4], 4294967168 }
 0x580   :  { %569 = vsyncpa [#allocation3], 1 }
 0x581   :  { %570 = vsyncpa [#allocation6], 1 }
 0x582   :  { %571 = vsyncpa [#allocation4], 1 }

</bundles_post_ra>
